<compile_context>
chip_gen: v7x
topology: tpu7x:2x2x1
jax: 0.10.0
libtpu: 0.0.40
codegen_flags: <defaults>
</compile_context>

<pallas_src>
import functools

import jax
import jax.numpy as jnp
from jax.experimental import pallas as pl
from jax.experimental.pallas import tpu as pltpu

IN_F = 600          # input feature count (kept unpadded; Mosaic pads K internally)
H1, H2, H3 = 512, 256, 128
OUT_PAD = 128       # lane-dense padded class dimension


def _mlp_kernel(x_ref,
                w1_ref, b1_ref,
                w2_ref, b2_ref,
                w3_ref, b3_ref,
                w4_ref, b4_ref,
                o_ref):
    # x tile: (TB, 600) in compute dtype (bf16 default / f32); accumulation in f32.
    h = jnp.tanh(
        jnp.dot(x_ref[...], w1_ref[...], preferred_element_type=jnp.float32)
        + b1_ref[...])
    h = jnp.tanh(
        jnp.dot(h.astype(w2_ref.dtype), w2_ref[...],
                preferred_element_type=jnp.float32)
        + b2_ref[...])
    h = jnp.tanh(
        jnp.dot(h.astype(w3_ref.dtype), w3_ref[...],
                preferred_element_type=jnp.float32)
        + b3_ref[...])
    o_ref[...] = (
        jnp.dot(h.astype(w4_ref.dtype), w4_ref[...],
                preferred_element_type=jnp.float32)
        + b4_ref[...])


def prepare_params(params, compute_dtype=jnp.bfloat16):
    """One-time conversion of PyTorch-shaped params to kernel layout.

    (out, in) weights -> (in, out); classifier padded to lane-dense N=128;
    biases -> (1, out) in f32.  Do this at parameter-load time, not per call.
    bf16 operands are the default (f32 accumulation inside the kernel).
    """
    num_classes = params["w4"].shape[0]

    w1 = params["w1"].T.astype(compute_dtype)                      # (600, 512)
    w2 = params["w2"].T.astype(compute_dtype)                      # (512, 256)
    w3 = params["w3"].T.astype(compute_dtype)                      # (256, 128)
    # Classifier: pad N num_classes -> 128 with zero columns (sliced off later).
    w4 = jnp.zeros((H3, OUT_PAD), compute_dtype).at[:, :num_classes].set(
        params["w4"].T.astype(compute_dtype))

    b1 = params["b1"].reshape(1, H1).astype(jnp.float32)
    b2 = params["b2"].reshape(1, H2).astype(jnp.float32)
    b3 = params["b3"].reshape(1, H3).astype(jnp.float32)
    b4 = jnp.zeros((1, OUT_PAD), jnp.float32).at[0, :num_classes].set(
        params["b4"].astype(jnp.float32))

    return {"w1": w1, "b1": b1, "w2": w2, "b2": b2,
            "w3": w3, "b3": b3, "w4": w4, "b4": b4,
            "num_classes": num_classes}


@functools.partial(jax.jit, static_argnames=("num_classes", "tb", "min_steps"))
def _forward(x, w, *, num_classes, tb, min_steps):
    B = x.shape[0]
    compute_dtype = w["w1"].dtype

    # Padding-aware tile choice: split B into balanced 8-row-aligned tiles.
    n_steps = max(1, -(-B // tb))                 # cdiv(B, tb)
    if B >= 2 * 8 and n_steps < min_steps:
        n_steps = min_steps                       # >=2 steps -> both TCs on v7x
    TB = ((-(-B // n_steps) + 7) // 8) * 8        # round_up(cdiv(B, n_steps), 8)
    Bp = n_steps * TB

    # Batch-dim-only zero pad; fused with the cast under jit (no extra HBM pass
    # over the feature dim -- x streams unpadded at K=600).
    xp = jnp.pad(x.astype(compute_dtype), ((0, Bp - B), (0, 0)))

    # Only x / out stream from HBM per grid step; weights & biases have
    # constant index_maps -> fetched once, resident in VMEM for all steps.
    const = lambda i: (0, 0)
    in_specs = [
        pl.BlockSpec((TB, IN_F), lambda i: (i, 0)),   # x tile
        pl.BlockSpec((IN_F, H1), const),              # w1
        pl.BlockSpec((1, H1), const),                 # b1
        pl.BlockSpec((H1, H2), const),                # w2
        pl.BlockSpec((1, H2), const),                 # b2
        pl.BlockSpec((H2, H3), const),                # w3
        pl.BlockSpec((1, H3), const),                 # b3
        pl.BlockSpec((H3, OUT_PAD), const),           # w4
        pl.BlockSpec((1, OUT_PAD), const),            # b4
    ]
    out_spec = pl.BlockSpec((TB, OUT_PAD), lambda i: (i, 0))

    itemsize = jnp.dtype(compute_dtype).itemsize
    weight_bytes = (IN_F * H1 + H1 * H2 + H2 * H3 + H3 * OUT_PAD) * itemsize \
        + (H1 + H2 + H3 + OUT_PAD) * 4
    cost = pl.CostEstimate(
        flops=2 * Bp * (IN_F * H1 + H1 * H2 + H2 * H3 + H3 * OUT_PAD),
        transcendentals=Bp * (H1 + H2 + H3),
        bytes_accessed=Bp * (IN_F * itemsize + OUT_PAD * 4) + weight_bytes,
    )

    out_padded = pl.pallas_call(
        _mlp_kernel,
        out_shape=jax.ShapeDtypeStruct((Bp, OUT_PAD), jnp.float32),
        grid=(Bp // TB,),
        in_specs=in_specs,
        out_specs=out_spec,
        compiler_params=pltpu.CompilerParams(
            dimension_semantics=("parallel",),        # v7x: shard batch over 2 TCs
            vmem_limit_bytes=32 * 1024 * 1024,        # headroom on v5e when TB>=2048
        ),
        cost_estimate=cost,
    )(xp, w["w1"], w["b1"], w["w2"], w["b2"],
      w["w3"], w["b3"], w["w4"], w["b4"])

    # Fused under jit with the pallas_call.
    return out_padded[:B, :num_classes]


def purchase_classifier_forward(x, prep, tb=1024, min_steps=2):
    """x: (B, 600) float32.  prep: output of prepare_params()."""
    weights = {k: v for k, v in prep.items() if k != "num_classes"}
    return _forward(x, weights, num_classes=prep["num_classes"],
                    tb=tb, min_steps=min_steps)


def init_params(key, num_classes=100):
    """Deterministic PyTorch-default-style init: U(-1/sqrt(fan_in), 1/sqrt(fan_in))."""
    dims = [(H1, IN_F), (H2, H1), (H3, H2), (num_classes, H3)]
    params = {}
    for i, (out_f, in_f) in enumerate(dims, start=1):
        key, kw, kb = jax.random.split(key, 3)
        bound = 1.0 / (in_f ** 0.5)
        params[f"w{i}"] = jax.random.uniform(
            kw, (out_f, in_f), jnp.float32, minval=-bound, maxval=bound)
        params[f"b{i}"] = jax.random.uniform(
            kb, (out_f,), jnp.float32, minval=-bound, maxval=bound)
    return params


def reference_forward(x, params):
    """Plain-JAX reference matching PyTorch semantics."""
    h = jnp.tanh(x @ params["w1"].T + params["b1"])
    h = jnp.tanh(h @ params["w2"].T + params["b2"])
    h = jnp.tanh(h @ params["w3"].T + params["b3"])
    return h @ params["w4"].T + params["b4"]


if __name__ == "__main__":
    key = jax.random.PRNGKey(0)
    key, kx = jax.random.split(key)

    B = 2
    num_classes = 100
    x = jax.random.normal(kx, (B, 600), jnp.float32)
    params = init_params(key, num_classes=num_classes)
    ref = reference_forward(x, params)

    # --- default bf16-operand path (f32 accumulation; MXU fast path) ---
    prep_bf16 = prepare_params(params)                       # bf16 by default
    out_bf16 = jax.block_until_ready(purchase_classifier_forward(x, prep_bf16))
    assert out_bf16.shape == (B, num_classes)
    assert jnp.allclose(out_bf16, ref, atol=2e-1, rtol=2e-1), "bf16 mismatch vs reference"

    # --- f32 path (exact vs reference) ---
    prep_f32 = prepare_params(params, compute_dtype=jnp.float32)
    out_f32 = jax.block_until_ready(purchase_classifier_forward(x, prep_f32))
    assert out_f32.shape == (B, num_classes)
    assert jnp.allclose(out_f32, ref, atol=1e-4, rtol=1e-4), "f32 mismatch vs reference"

    # --- awkward batch exercising balanced multi-step grid (B=300 -> 2 x 152) ---
    key, kx2 = jax.random.split(key)
    xb = jax.random.normal(kx2, (300, 600), jnp.float32)
    ref_b = reference_forward(xb, params)
    out_b = jax.block_until_ready(purchase_classifier_forward(xb, prep_f32))
    assert out_b.shape == (300, num_classes)
    assert jnp.allclose(out_b, ref_b, atol=1e-4, rtol=1e-4), "batched f32 mismatch"
    out_bb = jax.block_until_ready(purchase_classifier_forward(xb, prep_bf16))
    assert jnp.allclose(out_bb, ref_b, atol=2e-1, rtol=2e-1), "batched bf16 mismatch"

    print("KERNEL_OK")
</pallas_src>

<mosaic_0001>
module attributes {stable_mosaic.version = 11 : i64} {
  func.func @_mlp_kernel(%arg0: i32, %arg1: memref<8x600xbf16, #tpu.memory_space<vmem>>, %arg2: memref<600x512xbf16, #tpu.memory_space<vmem>>, %arg3: memref<1x512xf32, #tpu.memory_space<vmem>>, %arg4: memref<512x256xbf16, #tpu.memory_space<vmem>>, %arg5: memref<1x256xf32, #tpu.memory_space<vmem>>, %arg6: memref<256x128xbf16, #tpu.memory_space<vmem>>, %arg7: memref<1x128xf32, #tpu.memory_space<vmem>>, %arg8: memref<128x128xbf16, #tpu.memory_space<vmem>>, %arg9: memref<1x128xf32, #tpu.memory_space<vmem>>, %arg10: memref<8x128xf32, #tpu.memory_space<vmem>>) attributes {dimension_semantics = [#tpu.dimension_semantics<parallel>], iteration_bounds = array<i64: 1>, scalar_prefetch = 0 : i64, scratch_operands = 0 : i64, tpu.core_type = #tpu.core_type<tc>, window_params = [{transform_indices = @transform_0, window_bounds = array<i64: 8, 600>}, {pipeline_mode = #tpu.pipeline_mode<synchronous>, transform_indices = @transform_1, window_bounds = array<i64: 600, 512>}, {pipeline_mode = #tpu.pipeline_mode<synchronous>, transform_indices = @transform_2, window_bounds = array<i64: 1, 512>}, {pipeline_mode = #tpu.pipeline_mode<synchronous>, transform_indices = @transform_3, window_bounds = array<i64: 512, 256>}, {pipeline_mode = #tpu.pipeline_mode<synchronous>, transform_indices = @transform_4, window_bounds = array<i64: 1, 256>}, {pipeline_mode = #tpu.pipeline_mode<synchronous>, transform_indices = @transform_5, window_bounds = array<i64: 256, 128>}, {pipeline_mode = #tpu.pipeline_mode<synchronous>, transform_indices = @transform_6, window_bounds = array<i64: 1, 128>}, {pipeline_mode = #tpu.pipeline_mode<synchronous>, transform_indices = @transform_7, window_bounds = array<i64: 128, 128>}, {pipeline_mode = #tpu.pipeline_mode<synchronous>, transform_indices = @transform_8, window_bounds = array<i64: 1, 128>}, {transform_indices = @transform_9, window_bounds = array<i64: 8, 128>}]} {
    %c0 = arith.constant 0 : index
    %c0_0 = arith.constant 0 : index
    %0 = vector.load %arg1[%c0, %c0_0] : memref<8x600xbf16, #tpu.memory_space<vmem>>, vector<8x600xbf16>
    %c0_1 = arith.constant 0 : index
    %c0_2 = arith.constant 0 : index
    %1 = vector.load %arg2[%c0_1, %c0_2] : memref<600x512xbf16, #tpu.memory_space<vmem>>, vector<600x512xbf16>
    %cst = arith.constant dense<0.000000e+00> : vector<8x512xf32>
    %2 = tpu.matmul %0, %1, %cst {dimension_numbers = #tpu.dot_dimension_numbers<[1], [0], [0], [1], [0, 0, 1, 1], [], []>} : vector<8x600xbf16>, vector<600x512xbf16>, vector<8x512xf32> -> vector<8x512xf32>
    %c0_3 = arith.constant 0 : index
    %c0_4 = arith.constant 0 : index
    %3 = vector.load %arg3[%c0_3, %c0_4] : memref<1x512xf32, #tpu.memory_space<vmem>>, vector<1x512xf32>
    %4 = vector.broadcast %3 : vector<1x512xf32> to vector<8x512xf32>
    %5 = arith.addf %2, %4 : vector<8x512xf32>
    %6 = math.tanh %5 : vector<8x512xf32>
    %7 = arith.truncf %6 : vector<8x512xf32> to vector<8x512xbf16>
    %c0_5 = arith.constant 0 : index
    %c0_6 = arith.constant 0 : index
    %8 = vector.load %arg4[%c0_5, %c0_6] : memref<512x256xbf16, #tpu.memory_space<vmem>>, vector<512x256xbf16>
    %cst_7 = arith.constant dense<0.000000e+00> : vector<8x256xf32>
    %9 = tpu.matmul %7, %8, %cst_7 {dimension_numbers = #tpu.dot_dimension_numbers<[1], [0], [0], [1], [0, 0, 1, 1], [], []>} : vector<8x512xbf16>, vector<512x256xbf16>, vector<8x256xf32> -> vector<8x256xf32>
    %c0_8 = arith.constant 0 : index
    %c0_9 = arith.constant 0 : index
    %10 = vector.load %arg5[%c0_8, %c0_9] : memref<1x256xf32, #tpu.memory_space<vmem>>, vector<1x256xf32>
    %11 = vector.broadcast %10 : vector<1x256xf32> to vector<8x256xf32>
    %12 = arith.addf %9, %11 : vector<8x256xf32>
    %13 = math.tanh %12 : vector<8x256xf32>
    %14 = arith.truncf %13 : vector<8x256xf32> to vector<8x256xbf16>
    %c0_10 = arith.constant 0 : index
    %c0_11 = arith.constant 0 : index
    %15 = vector.load %arg6[%c0_10, %c0_11] : memref<256x128xbf16, #tpu.memory_space<vmem>>, vector<256x128xbf16>
    %cst_12 = arith.constant dense<0.000000e+00> : vector<8x128xf32>
    %16 = tpu.matmul %14, %15, %cst_12 {dimension_numbers = #tpu.dot_dimension_numbers<[1], [0], [0], [1], [0, 0, 1, 1], [], []>} : vector<8x256xbf16>, vector<256x128xbf16>, vector<8x128xf32> -> vector<8x128xf32>
    %c0_13 = arith.constant 0 : index
    %c0_14 = arith.constant 0 : index
    %17 = vector.load %arg7[%c0_13, %c0_14] : memref<1x128xf32, #tpu.memory_space<vmem>>, vector<1x128xf32>
    %18 = vector.broadcast %17 : vector<1x128xf32> to vector<8x128xf32>
    %19 = arith.addf %16, %18 : vector<8x128xf32>
    %20 = math.tanh %19 : vector<8x128xf32>
    %21 = arith.truncf %20 : vector<8x128xf32> to vector<8x128xbf16>
    %c0_15 = arith.constant 0 : index
    %c0_16 = arith.constant 0 : index
    %22 = vector.load %arg8[%c0_15, %c0_16] : memref<128x128xbf16, #tpu.memory_space<vmem>>, vector<128x128xbf16>
    %cst_17 = arith.constant dense<0.000000e+00> : vector<8x128xf32>
    %23 = tpu.matmul %21, %22, %cst_17 {dimension_numbers = #tpu.dot_dimension_numbers<[1], [0], [0], [1], [0, 0, 1, 1], [], []>} : vector<8x128xbf16>, vector<128x128xbf16>, vector<8x128xf32> -> vector<8x128xf32>
    %c0_18 = arith.constant 0 : index
    %c0_19 = arith.constant 0 : index
    %24 = vector.load %arg9[%c0_18, %c0_19] : memref<1x128xf32, #tpu.memory_space<vmem>>, vector<1x128xf32>
    %25 = vector.broadcast %24 : vector<1x128xf32> to vector<8x128xf32>
    %26 = arith.addf %23, %25 : vector<8x128xf32>
    %c0_20 = arith.constant 0 : index
    %c0_21 = arith.constant 0 : index
    %27 = vector.load %arg10[%c0_20, %c0_21] : memref<8x128xf32, #tpu.memory_space<vmem>>, vector<8x128xf32>
    tpu.vector_store %arg10[%c0_20, %c0_21], %26 {strides = array<i32>} : memref<8x128xf32, #tpu.memory_space<vmem>>, vector<8x128xf32>,
    return
  }
  func.func @transform_0(%arg0: i32) -> (i32, i32) {
    %c0_i32 = arith.constant 0 : i32
    %c0_i32_0 = arith.constant 0 : i32
    return %arg0, %c0_i32 : i32, i32
  }
  func.func @transform_1(%arg0: i32) -> (i32, i32) {
    %c0_i32 = arith.constant 0 : i32
    %c0_i32_0 = arith.constant 0 : i32
    %c0_i32_1 = arith.constant 0 : i32
    return %c0_i32, %c0_i32_0 : i32, i32
  }
  func.func @transform_2(%arg0: i32) -> (i32, i32) {
    %c0_i32 = arith.constant 0 : i32
    %c0_i32_0 = arith.constant 0 : i32
    %c0_i32_1 = arith.constant 0 : i32
    return %c0_i32, %c0_i32_0 : i32, i32
  }
  func.func @transform_3(%arg0: i32) -> (i32, i32) {
    %c0_i32 = arith.constant 0 : i32
    %c0_i32_0 = arith.constant 0 : i32
    %c0_i32_1 = arith.constant 0 : i32
    return %c0_i32, %c0_i32_0 : i32, i32
  }
  func.func @transform_4(%arg0: i32) -> (i32, i32) {
    %c0_i32 = arith.constant 0 : i32
    %c0_i32_0 = arith.constant 0 : i32
    %c0_i32_1 = arith.constant 0 : i32
    return %c0_i32, %c0_i32_0 : i32, i32
  }
  func.func @transform_5(%arg0: i32) -> (i32, i32) {
    %c0_i32 = arith.constant 0 : i32
    %c0_i32_0 = arith.constant 0 : i32
    %c0_i32_1 = arith.constant 0 : i32
    return %c0_i32, %c0_i32_0 : i32, i32
  }
  func.func @transform_6(%arg0: i32) -> (i32, i32) {
    %c0_i32 = arith.constant 0 : i32
    %c0_i32_0 = arith.constant 0 : i32
    %c0_i32_1 = arith.constant 0 : i32
    return %c0_i32, %c0_i32_0 : i32, i32
  }
  func.func @transform_7(%arg0: i32) -> (i32, i32) {
    %c0_i32 = arith.constant 0 : i32
    %c0_i32_0 = arith.constant 0 : i32
    %c0_i32_1 = arith.constant 0 : i32
    return %c0_i32, %c0_i32_0 : i32, i32
  }
  func.func @transform_8(%arg0: i32) -> (i32, i32) {
    %c0_i32 = arith.constant 0 : i32
    %c0_i32_0 = arith.constant 0 : i32
    %c0_i32_1 = arith.constant 0 : i32
    return %c0_i32, %c0_i32_0 : i32, i32
  }
  func.func @transform_9(%arg0: i32) -> (i32, i32) {
    %c0_i32 = arith.constant 0 : i32
    %c0_i32_0 = arith.constant 0 : i32
    return %arg0, %c0_i32 : i32, i32
  }
}

</mosaic_0001>

<bundles_post_ra>
// kernel: _forward.1
= control target key start
LH: loop header
LB: loop body
LE: loop exit
PB: predicated region body
PF: predicated region fallthrough
CT: control target
= control target key end

     0   :  { %14 = vsyncpa [#allocation3], 0  ;;  %s3069_s0 = inlined_call_operand.vmem [shape: bf16[8,600], index: 0, kind: input, shape index: {}]   ;;  %s3070_s1 = inlined_call_operand.hbm [shape: bf16[600,512], index: 1, kind: input, shape index: {}]   ;;  %s3071_s2 = inlined_call_operand.vmem [shape: f32[1,512], index: 2, kind: input, shape index: {}]   ;;  %s3072_s3 = inlined_call_operand.hbm [shape: bf16[512,256], index: 3, kind: input, shape index: {}]   ;;  %s3073_s4 = inlined_call_operand.vmem [shape: f32[1,256], index: 4, kind: input, shape index: {}]   ;;  %s3074_s5 = inlined_call_operand.hbm [shape: bf16[256,128], index: 5, kind: input, shape index: {}]   ;;  %s3075_s6 = inlined_call_operand.vmem [shape: f32[1,128], index: 6, kind: input, shape index: {}]   ;;  %s3076_s7 = inlined_call_operand.vmem [shape: bf16[128,128], index: 7, kind: input, shape index: {}]   ;;  %s3077_s8 = inlined_call_operand.hbm [shape: f32[1,128], index: 8, kind: input, shape index: {}]   ;;  %s3078_s9 = inlined_call_operand.vmem [shape: f32[8,128], index: 9, kind: output, shape index: {}]  }
   0x1   :  { %15 = vsyncpa [#allocation5], 0 }
   0x2   :  { %16 = vsyncpa [#allocation8], 0  ;;  %s2876_s30 = smov [#allocation4]   ;;  %s2782_s13 = scalar_lea.hbm %s3072_s3, 8192 }
   0x3   :  { %s38_s10 = sshll.u32 %s2876_s30, 4  ;;  %p2783_p0 = scmp.ne.s32.totalorder %s3072_s3, %s2782_s13  ;;  %s39_s10 = int_to_ptr.vmem [resolvable:$true] %s38_s10 }
   0x4   :  { %p2786_p1 = scmp.lt.u32.totalorder %s2782_s13, %s3072_s3 }
   0x6   :  { %p2788_p2 = pnand %p2786_p1, %p2783_p0 }
   0x8   :  { %2791 = shalt.err (!%p2788_p2)
}
   0x9   :  { %s2792_s18 = scalar_lea.vmem %s39_s10, 8192  ;;  %p2797_p4 = scmp.lt.s32.totalorder %s39_s10, %s39_s10 }
   0xa   :  { %p2793_p3 = scmp.ne.s32.totalorder %s39_s10, %s2792_s18  ;;  %p2798_p5 = scmp.lt.s32.totalorder %s2792_s18, %s2792_s18 }
   0xc   :  { %p2799_p6 = por %p2798_p5, %p2797_p4 }
   0xe   :  { %p2800_p7 = pnand %p2799_p6, %p2793_p3 }
  0x10   :  { %2803 = shalt.err (!%p2800_p7)
}
  0x11   :  { %s2877_s19 = smov 128   ;;  %s2878_s20 = smov 8  }
  0x12   :  { %44 = dma.hbm_to_vmem [thread:$0]  %s3072_s3, 8192, %s39_s10, [#allocation5], %s2877_s19, %s2877_s19, %s2878_s20  }
  0x13   :  { %s2879_s23 = smov [#allocation2]   ;;  %s2804_s27 = scalar_lea.hbm %s3070_s1, 19200 }
  0x14   :  { %s24_s24 = sshll.u32 %s2879_s23, 4  ;;  %p2805_p8 = scmp.ne.s32.totalorder %s3070_s1, %s2804_s27  ;;  %s25_s24 = int_to_ptr.vmem [resolvable:$true] %s24_s24 }
  0x15   :  { %p2808_p9 = scmp.lt.u32.totalorder %s2804_s27, %s3070_s1 }
  0x17   :  { %p2810_p10 = pnand %p2808_p9, %p2805_p8 }
  0x19   :  { %2813 = shalt.err (!%p2810_p10)
}
  0x1a   :  { %s2814_s12 = scalar_lea.vmem %s25_s24, 19200  ;;  %p2819_p12 = scmp.lt.s32.totalorder %s25_s24, %s25_s24 }
  0x1b   :  { %p2815_p11 = scmp.ne.s32.totalorder %s25_s24, %s2814_s12  ;;  %p2820_p13 = scmp.lt.s32.totalorder %s2814_s12, %s2814_s12 }
  0x1d   :  { %p2821_p0 = por %p2820_p13, %p2819_p12 }
  0x1f   :  { %p2822_p1 = pnand %p2821_p0, %p2815_p11 }
  0x21   :  { %2825 = shalt.err (!%p2822_p1)
}
  0x22   :  { %s2880_s3 = smov 256   ;;  %s2881_s10 = smov 16  }
  0x23   :  { %30 = dma.hbm_to_vmem [thread:$0]  %s3070_s1, 19200, %s25_s24, [#allocation3], %s2880_s3, %s2880_s3, %s2881_s10  }
  0x24   :  { %s2882_s15 = smov [#allocation6]   ;;  %s2826_s19 = scalar_lea.hbm %s3074_s5, 2048 }
  0x25   :  { %s52_s16 = sshll.u32 %s2882_s15, 4  ;;  %p2827_p2 = scmp.ne.s32.totalorder %s3074_s5, %s2826_s19  ;;  %s53_s16 = int_to_ptr.vmem [resolvable:$true] %s52_s16 }
  0x26   :  { %p2830_p3 = scmp.lt.u32.totalorder %s2826_s19, %s3074_s5 }
  0x28   :  { %p2832_p4 = pnand %p2830_p3, %p2827_p2 }
  0x2a   :  { %2835 = shalt.err (!%p2832_p4)
}
  0x2b   :  { %s2836_s25 = scalar_lea.vmem %s53_s16, 2048  ;;  %p2841_p6 = scmp.lt.s32.totalorder %s53_s16, %s53_s16 }
  0x2c   :  { %p2837_p5 = scmp.ne.s32.totalorder %s53_s16, %s2836_s25  ;;  %p2842_p7 = scmp.lt.s32.totalorder %s2836_s25, %s2836_s25 }
  0x2e   :  { %p2843_p8 = por %p2842_p7, %p2841_p6 }
  0x30   :  { %p2844_p9 = pnand %p2843_p8, %p2837_p5 }
  0x32   :  { %2847 = shalt.err (!%p2844_p9)
}
  0x33   :  { %s2883_s1 = smov 64   ;;  %s2884_s24 = smov 4  }
  0x34   :  { %58 = dma.hbm_to_vmem [thread:$0]  %s3074_s5, 2048, %s53_s16, [#allocation5], %s2883_s1, %s2883_s1, %s2884_s24  }
  0x35   :  { %s2885_s28 = smov [#allocation7]   ;;  %s2848_s12 = scalar_lea.hbm %s3077_s8, 16 }
  0x36   :  { %s69_s29 = sshll.u32 %s2885_s28, 4  ;;  %p2849_p10 = scmp.ne.s32.totalorder %s3077_s8, %s2848_s12  ;;  %s70_s29 = int_to_ptr.vmem [resolvable:$true] %s69_s29 }
  0x37   :  { %p2852_p11 = scmp.lt.u32.totalorder %s2848_s12, %s3077_s8 }
  0x39   :  { %p2854_p12 = pnand %p2852_p11, %p2849_p10 }
  0x3b   :  { %2857 = shalt.err (!%p2854_p12)
}
  0x3c   :  { %s2858_s15 = scalar_lea.vmem %s70_s29, 16  ;;  %s2862_s5 = scalar_lea.vmem %s70_s29, 32 }
  0x3d   :  { %p2859_p13 = scmp.ne.s32.totalorder %s70_s29, %s2858_s15  ;;  %p2863_p0 = scmp.lt.s32.totalorder %s70_s29, %s70_s29 }
  0x3e   :  { %p2864_p1 = scmp.lt.s32.totalorder %s2862_s5, %s2858_s15 }
  0x40   :  { %p2865_p2 = por %p2864_p1, %p2863_p0 }
  0x42   :  { %p2866_p3 = pnand %p2865_p2, %p2859_p13 }
  0x44   :  { %2869 = shalt.err (!%p2866_p3)
}
  0x45   :  { %72 = dma.hbm_to_vmem [thread:$0]  %s3077_s8, 16, %s70_s29, [#allocation8]  }
  0x46   :  { %2870 = dma.done.wait [#allocation3], 19200  }
  0x47   :  { %2871 = vsyncadd [#allocation3], 4294948096 }
  0x48   :  { %2872 = dma.done.wait [#allocation5], 10240  }
  0x49   :  { %2873 = vsyncadd [#allocation5], 4294957056 }
  0x4a   :  { %2874 = dma.done.wait [#allocation8], 16  }
  0x4b   :  { %2875 = vsyncadd [#allocation8], 4294967280  ;;  %v2886_v0 = vmov 0   ;;  %v2416_v1 = vld [vmem:[#allocation2 + $0x4] ss:$16 sps:$4 sm:$0xff]   ;;  %vm1032_vm0 = vcmask 1043456  }
  0x4c   :  { %1159 = vmatprep.mubr.bf16.mxu1 %v2886_v0  ;;  %v2418_v2 = vld [vmem:[#allocation2 + $0x404] ss:$16 sps:$4 sm:$0xff]   ;;  %1045 = vmatprep.subr.bf16.mxu0 %v2416_v1  ;;  %v2420_v3 = vld [vmem:[#allocation2] ss:$16 sps:$4 sm:$0xff]   ;;  %v2455_v28 = vld [vmem:[#allocation2 + $0xc] ss:$16 sps:$4 sm:$0xff]  }
  0x4d   :  { %v2421_v4 = vld [vmem:[#allocation2 + $0x400] ss:$16 sps:$4 sm:$0xff]   ;;  %1127 = vmatprep.subr.bf16.mxu1 %v2418_v2  ;;  %v2422_v5 = vld [vmem:[#allocation2 + $0x24] ss:$16 sps:$4 sm:$0xff]   ;;  %1046 = vmatpush1.bf16.msra.mxu0 %v2420_v3  ;;  %v2453_v29 = vld [vmem:[#allocation2 + $0x8] ss:$16 sps:$4 sm:$0xff]  }
  0x4e   :  { %1128 = vmatpush1.bf16.msra.mxu1 %v2421_v4  ;;  %v2424_v6 = vld [vmem:[#allocation2 + $0x424] ss:$16 sps:$4 sm:$0xff]   ;;  %v2426_v7 = vld [vmem:[#allocation2 + $0x20] ss:$16 sps:$4 sm:$0xff]   ;;  %1047 = vmatprep.subr.bf16.mxu0 %v2422_v5  ;;  %vm1028_vm1 = vcmask 719872   ;;  %vm2888_vm2 = vmmov 0  }
  0x4f   :  { %v2427_v8 = vld [vmem:[#allocation2 + $0x420] ss:$16 sps:$4 sm:$0xff]   ;;  %1129 = vmatprep.subr.bf16.mxu1 %v2424_v6  ;;  %v2428_v9 = vld [vmem:[#allocation2 + $0x44] ss:$16 sps:$4 sm:$0xff]   ;;  %v2462_v33 = vld [vmem:[#allocation2 + $0x2c] ss:$16 sps:$4 sm:$0xff]  }
  0x50   :  { %v2430_v10 = vld [vmem:[#allocation2 + $0x444] ss:$16 sps:$4 sm:$0xff]   ;;  %v2432_v11 = vld [vmem:[#allocation2 + $0x40] ss:$16 sps:$4 sm:$0xff]   ;;  %v2460_v34 = vld [vmem:[#allocation2 + $0x28] ss:$16 sps:$4 sm:$0xff]  }
  0x51   :  { %v2433_v12 = vld [vmem:[#allocation2 + $0x440] ss:$16 sps:$4 sm:$0xff]   ;;  %1048 = vmatpush1.bf16.msra.mxu0 %v2426_v7  ;;  %v2434_v13 = vld [vmem:[#allocation2 + $0x64] ss:$16 sps:$4 sm:$0xff]   ;;  %v2468_v37 = vld [vmem:[#allocation2 + $0x4c] ss:$16 sps:$4 sm:$0xff]  }
  0x52   :  { %1130 = vmatpush1.bf16.msra.mxu1 %v2427_v8  ;;  %1049 = vmatprep.subr.bf16.mxu0 %v2428_v9  ;;  %v2436_v14 = vld [vmem:[#allocation2 + $0x464] ss:$16 sps:$4 sm:$0xff]   ;;  %v2438_v15 = vld [vmem:[#allocation2 + $0x60] ss:$16 sps:$4 sm:$0xff]   ;;  %v2466_v38 = vld [vmem:[#allocation2 + $0x48] ss:$16 sps:$4 sm:$0xff]  }
  0x53   :  { %1131 = vmatprep.subr.bf16.mxu1 %v2430_v10  ;;  %v2439_v16 = vld [vmem:[#allocation2 + $0x460] ss:$16 sps:$4 sm:$0xff]   ;;  %v2440_v17 = vld [vmem:[#allocation2 + $0x84] ss:$16 sps:$4 sm:$0xff]   ;;  %v2474_v41 = vld [vmem:[#allocation2 + $0x6c] ss:$16 sps:$4 sm:$0xff]  }
  0x54   :  { %v2442_v18 = vld [vmem:[#allocation2 + $0x484] ss:$16 sps:$4 sm:$0xff]   ;;  %v2444_v20 = vld [vmem:[#allocation2 + $0x80] ss:$16 sps:$4 sm:$0xff]   ;;  %v2472_v42 = vld [vmem:[#allocation2 + $0x68] ss:$16 sps:$4 sm:$0xff]  }
  0x55   :  { %1050 = vmatpush1.bf16.msra.mxu0 %v2432_v11  ;;  %v237_v19 = vld [vmem:[#allocation2 + $0x4a0] sm:$0xff]  ;;  %v2457_v30 = vld [vmem:[%s3069_s0 + $0x10] ss:$0 sps:$4 sm:$0xff]   ;;  %v2480_v45 = vld [vmem:[#allocation2 + $0x8c] ss:$16 sps:$4 sm:$0xff]  }
  0x56   :  { %1132 = vmatpush1.bf16.msra.mxu1 %v2433_v12  ;;  %1051 = vmatprep.subr.bf16.mxu0 %v2434_v13  ;;  %v2445_v21 = vld [vmem:[#allocation2 + $0x480] ss:$16 sps:$4 sm:$0xff]   ;;  %v2446_v22 = vld [vmem:[#allocation2 + $0xa4] ss:$16 sps:$4 sm:$0xff]   ;;  %v2231_v23 = vcombine.high %v237_v19, %v237_v19  ;;  %v2230_v24 = vcombine.low %v237_v19, %v237_v19  ;;  %v2478_v46 = vld [vmem:[#allocation2 + $0x88] ss:$16 sps:$4 sm:$0xff]  }
  0x57   :  { %1133 = vmatprep.subr.bf16.mxu1 %v2436_v14  ;;  %v2449_v25 = vld [vmem:[#allocation2 + $0xa0] ss:$16 sps:$4 sm:$0xff]   ;;  %v2451_v26 = vld [vmem:[#allocation2 + $0xc4] ss:$16 sps:$4 sm:$0xff]   ;;  %v2486_v49 = vld [vmem:[#allocation2 + $0xac] ss:$16 sps:$4 sm:$0xff]  }
  0x58   :  { %v1034_v27 = vsel %vm1032_vm0, %v2230_v24, 0  ;;  %v2456_v31 = vld [vmem:[#allocation2 + $0xc0] ss:$16 sps:$4 sm:$0xff]   ;;  %v2458_v32 = vld [vmem:[#allocation2 + $0xe4] ss:$16 sps:$4 sm:$0xff]  }
  0x59   :  { %1052 = vmatpush1.bf16.msra.mxu0 %v2438_v15  ;;  %v2463_v35 = vld [vmem:[#allocation2 + $0xe0] ss:$16 sps:$4 sm:$0xff]   ;;  %v2464_v36 = vld [vmem:[#allocation2 + $0x104] ss:$16 sps:$4 sm:$0xff]   ;;  %v2484_v51 = vld [vmem:[#allocation2 + $0xa8] ss:$16 sps:$4 sm:$0xff]  }
  0x5a   :  { %1134 = vmatpush1.bf16.msra.mxu1 %v2439_v16  ;;  %1053 = vmatprep.subr.bf16.mxu0 %v2440_v17  ;;  %v2469_v39 = vld [vmem:[#allocation2 + $0x100] ss:$16 sps:$4 sm:$0xff]   ;;  %v2470_v40 = vld [vmem:[#allocation2 + $0x124] ss:$16 sps:$4 sm:$0xff]   ;;  %v2492_v55 = vld [vmem:[#allocation2 + $0xcc] ss:$16 sps:$4 sm:$0xff]  }
  0x5b   :  { %1135 = vmatprep.subr.bf16.mxu1 %v2442_v18  ;;  %v2475_v43 = vld [vmem:[#allocation2 + $0x120] ss:$16 sps:$4 sm:$0xff]   ;;  %v2476_v44 = vld [vmem:[#allocation2 + $0x144] ss:$16 sps:$4 sm:$0xff]   ;;  %v2490_v56 = vld [vmem:[#allocation2 + $0xc8] ss:$16 sps:$4 sm:$0xff]  }
  0x5c   :  { %v2481_v47 = vld [vmem:[#allocation2 + $0x140] ss:$16 sps:$4 sm:$0xff]   ;;  %v2482_v48 = vld [vmem:[#allocation2 + $0x164] ss:$16 sps:$4 sm:$0xff]   ;;  %v2498_v59 = vld [vmem:[#allocation2 + $0xec] ss:$16 sps:$4 sm:$0xff]  }
  0x5d   :  { %1054 = vmatpush1.bf16.msra.mxu0 %v2444_v20  ;;  %v86_v50 = vld [vmem:[%s3069_s0] sm:$0xff]  ;;  %v2496_v60 = vld [vmem:[#allocation2 + $0xe8] ss:$16 sps:$4 sm:$0xff]   ;;  %v2504_v63 = vld [vmem:[#allocation2 + $0x10c] ss:$16 sps:$4 sm:$0xff]  }
  0x5e   :  { %1136 = vmatpush1.bf16.msra.mxu1 %v2445_v21  ;;  %1055 = vmatprep.subr.bf16.mxu0 %v2446_v22  ;;  %v2487_v52 = vld [vmem:[#allocation2 + $0x160] ss:$16 sps:$4 sm:$0xff]   ;;  %v2078_v53 = vcombine.high %v86_v50, %v86_v50  ;;  %v2488_v54 = vld [vmem:[#allocation2 + $0x184] ss:$16 sps:$4 sm:$0xff]   ;;  %v2502_v1 = vld [vmem:[#allocation2 + $0x108] ss:$16 sps:$4 sm:$0xff]   ;;  %v2077_v9 = vcombine.low %v86_v50, %v86_v50 }
  0x5f   :  { %2234 = vmatprep.subr.msk.bf16.mxu1 %vm1032_vm0, %v2231_v23  ;;  %v2493_v57 = vld [vmem:[#allocation2 + $0x180] ss:$16 sps:$4 sm:$0xff]   ;;  %v2494_v58 = vld [vmem:[#allocation2 + $0x1a4] ss:$16 sps:$4 sm:$0xff]   ;;  %v2510_v4 = vld [vmem:[#allocation2 + $0x12c] ss:$16 sps:$4 sm:$0xff]  }
  0x60   :  { %1077 = vmatprep.mubr.bf16.mxu0 %v2078_v53  ;;  %v2499_v61 = vld [vmem:[#allocation2 + $0x1a0] ss:$16 sps:$4 sm:$0xff]   ;;  %v2500_v62 = vld [vmem:[#allocation2 + $0x1c4] ss:$16 sps:$4 sm:$0xff]   ;;  %v2508_v5 = vld [vmem:[#allocation2 + $0x128] ss:$16 sps:$4 sm:$0xff]  }
  0x61   :  { %1056 = vmatpush1.bf16.msra.mxu0 %v2449_v25  ;;  %v2505_v2 = vld [vmem:[#allocation2 + $0x1c0] ss:$16 sps:$4 sm:$0xff]   ;;  %v2506_v3 = vld [vmem:[#allocation2 + $0x1e4] ss:$16 sps:$4 sm:$0xff]   ;;  %v2519_v8 = vld [vmem:[#allocation2 + $0x14c] ss:$16 sps:$4 sm:$0xff]  }
  0x62   :  { %1138 = vmatpush1.bf16.msra.mxu1 %v1034_v27  ;;  %1057 = vmatprep.subr.bf16.mxu0 %v2451_v26  ;;  %v2511_v6 = vld [vmem:[#allocation2 + $0x1e0] ss:$16 sps:$4 sm:$0xff]   ;;  %v2516_v7 = vld [vmem:[#allocation2 + $0x204] ss:$16 sps:$4 sm:$0xff]   ;;  %v2517_v11 = vld [vmem:[#allocation2 + $0x148] ss:$16 sps:$4 sm:$0xff]  }
  0x63   :  { %1168 = vmatprep.subr.bf16.mxu1 %v2455_v28  ;;  %v2514_v10 = vld [vmem:[#allocation2 + $0x200] ss:$16 sps:$4 sm:$0xff]   ;;  %v2522_v12 = vld [vmem:[#allocation2 + $0x224] ss:$16 sps:$4 sm:$0xff]   ;;  %v2525_v13 = vld [vmem:[#allocation2 + $0x16c] ss:$16 sps:$4 sm:$0xff]  }
  0x64   :  { %v2520_v14 = vld [vmem:[#allocation2 + $0x220] ss:$16 sps:$4 sm:$0xff]   ;;  %v2523_v15 = vld [vmem:[#allocation2 + $0x168] ss:$16 sps:$4 sm:$0xff]   ;;  %v2528_v16 = vld [vmem:[#allocation2 + $0x244] ss:$16 sps:$4 sm:$0xff]  }
  0x65   :  { %2235 = vmatmul.mubr.msk.bf16.vlgmr.msra.gmra.mrb[0].mxu1 %vm1028_vm1, %v2457_v30  ;;  %1058 = vmatpush1.bf16.msra.mxu0 %v2456_v31  ;;  %v2531_v17 = vld [vmem:[#allocation2 + $0x18c] ss:$16 sps:$4 sm:$0xff]   ;;  %v2526_v18 = vld [vmem:[#allocation2 + $0x240] ss:$16 sps:$4 sm:$0xff]   ;;  %v2529_v19 = vld [vmem:[#allocation2 + $0x188] ss:$16 sps:$4 sm:$0xff]  }
  0x66   :  { %1169 = vmatpush1.bf16.msra.mxu1 %v2453_v29  ;;  %1059 = vmatprep.subr.bf16.mxu0 %v2458_v32  ;;  %v2534_v20 = vld [vmem:[#allocation2 + $0x264] ss:$16 sps:$4 sm:$0xff]   ;;  %v2537_v21 = vld [vmem:[#allocation2 + $0x1ac] ss:$16 sps:$4 sm:$0xff]   ;;  %v2532_v22 = vld [vmem:[#allocation2 + $0x260] ss:$16 sps:$4 sm:$0xff]  }
  0x67   :  { %1170 = vmatprep.subr.bf16.mxu1 %v2462_v33  ;;  %1200 = vmatprep.mubr.bf16.mxu1 %v2078_v53  ;;  %v2535_v23 = vld [vmem:[#allocation2 + $0x1a8] ss:$16 sps:$4 sm:$0xff]   ;;  %v2540_v24 = vld [vmem:[#allocation2 + $0x284] ss:$16 sps:$4 sm:$0xff]   ;;  %v2543_v25 = vld [vmem:[#allocation2 + $0x1cc] ss:$16 sps:$4 sm:$0xff]  }
  0x68   :  { %v2538_v26 = vld [vmem:[#allocation2 + $0x280] ss:$16 sps:$4 sm:$0xff]   ;;  %v2541_v27 = vld [vmem:[#allocation2 + $0x1c8] ss:$16 sps:$4 sm:$0xff]   ;;  %v2546_v28 = vld [vmem:[#allocation2 + $0x2a4] ss:$16 sps:$4 sm:$0xff]  }
  0x69   :  { %1060 = vmatpush1.bf16.msra.mxu0 %v2463_v35  ;;  %v2549_v29 = vld [vmem:[#allocation2 + $0x1ec] ss:$16 sps:$4 sm:$0xff]   ;;  %v2544_v30 = vld [vmem:[#allocation2 + $0x2a0] ss:$16 sps:$4 sm:$0xff]   ;;  %v2547_v31 = vld [vmem:[#allocation2 + $0x1e8] ss:$16 sps:$4 sm:$0xff]  }
  0x6a   :  { %1171 = vmatpush1.bf16.msra.mxu1 %v2460_v34  ;;  %1061 = vmatprep.subr.bf16.mxu0 %v2464_v36  ;;  %v2552_v32 = vld [vmem:[#allocation2 + $0x2c4] ss:$16 sps:$4 sm:$0xff]   ;;  %v2555_v33 = vld [vmem:[#allocation2 + $0x20c] ss:$16 sps:$4 sm:$0xff]   ;;  %v2550_v36 = vld [vmem:[#allocation2 + $0x2c0] ss:$16 sps:$4 sm:$0xff]  }
  0x6b   :  { %1172 = vmatprep.subr.bf16.mxu1 %v2468_v37  ;;  %v3000_v34 = vld [vmem:[%s3069_s0 + $0x8] sm:$0xff]  ;;  %v2576_v50 = vld [vmem:[#allocation2 + $0x344] ss:$16 sps:$4 sm:$0xff]  }
  0x6c   :  { %v2080_v35 = vcombine.high %v3000_v34, %v3000_v34  ;;  %v2553_v37 = vld [vmem:[#allocation2 + $0x208] ss:$16 sps:$4 sm:$0xff]  }
  0x6d   :  { %1062 = vmatpush1.bf16.msra.mxu0 %v2469_v39  ;;  %v2561_v39 = vld [vmem:[#allocation2 + $0x22c] ss:$16 sps:$4 sm:$0xff]   ;;  %v2577_v53 = vld [vmem:[#allocation2 + $0x288] ss:$16 sps:$4 sm:$0xff]  }
  0x6e   :  { %1173 = vmatpush1.bf16.msra.mxu1 %v2466_v38  ;;  %1063 = vmatprep.subr.bf16.mxu0 %v2470_v40  ;;  %v2558_v38 = vld [vmem:[#allocation2 + $0x2e4] ss:$16 sps:$4 sm:$0xff]   ;;  %v2556_v40 = vld [vmem:[#allocation2 + $0x2e0] ss:$16 sps:$4 sm:$0xff]  }
  0x6f   :  { %1174 = vmatprep.subr.bf16.mxu1 %v2474_v41  ;;  %v2559_v41 = vld [vmem:[#allocation2 + $0x228] ss:$16 sps:$4 sm:$0xff]  }
  0x71   :  { %1064 = vmatpush1.bf16.msra.mxu0 %v2475_v43  ;;  %v2567_v43 = vld [vmem:[#allocation2 + $0x24c] ss:$16 sps:$4 sm:$0xff]  }
  0x72   :  { %1175 = vmatpush1.bf16.msra.mxu1 %v2472_v42  ;;  %1065 = vmatprep.subr.bf16.mxu0 %v2476_v44  ;;  %v2564_v42 = vld [vmem:[#allocation2 + $0x304] ss:$16 sps:$4 sm:$0xff]   ;;  %v2562_v44 = vld [vmem:[#allocation2 + $0x300] ss:$16 sps:$4 sm:$0xff]  }
  0x73   :  { %1176 = vmatprep.subr.bf16.mxu1 %v2480_v45  ;;  %v2565_v45 = vld [vmem:[#allocation2 + $0x248] ss:$16 sps:$4 sm:$0xff]  }
  0x75   :  { %1066 = vmatpush1.bf16.msra.mxu0 %v2481_v47  ;;  %v2573_v47 = vld [vmem:[#allocation2 + $0x26c] ss:$16 sps:$4 sm:$0xff]  }
  0x76   :  { %1177 = vmatpush1.bf16.msra.mxu1 %v2478_v46  ;;  %1067 = vmatprep.subr.bf16.mxu0 %v2482_v48  ;;  %v2570_v46 = vld [vmem:[#allocation2 + $0x324] ss:$16 sps:$4 sm:$0xff]   ;;  %v2568_v48 = vld [vmem:[#allocation2 + $0x320] ss:$16 sps:$4 sm:$0xff]  }
  0x77   :  { %1178 = vmatprep.subr.bf16.mxu1 %v2486_v49  ;;  %v2571_v49 = vld [vmem:[#allocation2 + $0x268] ss:$16 sps:$4 sm:$0xff]  }
  0x79   :  { %1068 = vmatpush1.bf16.msra.mxu0 %v2487_v52  ;;  %v2574_v52 = vld [vmem:[#allocation2 + $0x340] ss:$16 sps:$4 sm:$0xff]  }
  0x7a   :  { %1179 = vmatpush1.bf16.msra.mxu1 %v2484_v51  ;;  %1069 = vmatprep.subr.bf16.mxu0 %v2488_v54  ;;  %v2579_v51 = vld [vmem:[#allocation2 + $0x28c] ss:$16 sps:$4 sm:$0xff]   ;;  %v2582_v54 = vld [vmem:[#allocation2 + $0x364] ss:$16 sps:$4 sm:$0xff]  }
  0x7b   :  { %1180 = vmatprep.subr.bf16.mxu1 %v2492_v55  ;;  %v2585_v55 = vld [vmem:[#allocation2 + $0x2ac] ss:$16 sps:$4 sm:$0xff]  }
  0x7d   :  { %1070 = vmatpush1.bf16.msra.mxu0 %v2493_v57  ;;  %v2583_v57 = vld [vmem:[#allocation2 + $0x2a8] ss:$16 sps:$4 sm:$0xff]  }
  0x7e   :  { %1181 = vmatpush1.bf16.msra.mxu1 %v2490_v56  ;;  %1071 = vmatprep.subr.bf16.mxu0 %v2494_v58  ;;  %v2580_v56 = vld [vmem:[#allocation2 + $0x360] ss:$16 sps:$4 sm:$0xff]   ;;  %v2588_v58 = vld [vmem:[#allocation2 + $0x384] ss:$16 sps:$4 sm:$0xff]  }
  0x7f   :  { %1182 = vmatprep.subr.bf16.mxu1 %v2498_v59  ;;  %v2591_v59 = vld [vmem:[#allocation2 + $0x2cc] ss:$16 sps:$4 sm:$0xff]  }
  0x81   :  { %1072 = vmatpush1.bf16.msra.mxu0 %v2499_v61  ;;  %v2589_v61 = vld [vmem:[#allocation2 + $0x2c8] ss:$16 sps:$4 sm:$0xff]  }
  0x82   :  { %1183 = vmatpush1.bf16.msra.mxu1 %v2496_v60  ;;  %1073 = vmatprep.subr.bf16.mxu0 %v2500_v62  ;;  %v2586_v60 = vld [vmem:[#allocation2 + $0x380] ss:$16 sps:$4 sm:$0xff]   ;;  %v2594_v62 = vld [vmem:[#allocation2 + $0x3a4] ss:$16 sps:$4 sm:$0xff]  }
  0x83   :  { %1184 = vmatprep.subr.bf16.mxu1 %v2504_v63  ;;  %v2597_v63 = vld [vmem:[#allocation2 + $0x2ec] ss:$16 sps:$4 sm:$0xff]  }
  0x85   :  { %1074 = vmatpush1.bf16.msra.mxu0 %v2505_v2  ;;  %v2595_v2 = vld [vmem:[#allocation2 + $0x2e8] ss:$16 sps:$4 sm:$0xff]  }
  0x86   :  { %1185 = vmatpush1.bf16.msra.mxu1 %v2502_v1  ;;  %1075 = vmatprep.subr.bf16.mxu0 %v2506_v3  ;;  %v2592_v1 = vld [vmem:[#allocation2 + $0x3a0] ss:$16 sps:$4 sm:$0xff]   ;;  %v2600_v3 = vld [vmem:[#allocation2 + $0x3c4] ss:$16 sps:$4 sm:$0xff]  }
  0x87   :  { %1186 = vmatprep.subr.bf16.mxu1 %v2510_v4  ;;  %v2603_v4 = vld [vmem:[#allocation2 + $0x30c] ss:$16 sps:$4 sm:$0xff]  }
  0x89   :  { %1076 = vmatpush1.bf16.msra.mxu0 %v2511_v6  ;;  %v2601_v6 = vld [vmem:[#allocation2 + $0x308] ss:$16 sps:$4 sm:$0xff]  }
  0x8a   :  { %1187 = vmatpush1.bf16.msra.mxu1 %v2508_v5  ;;  %1086 = vmatprep.subr.bf16.mxu0 %v2516_v7  ;;  %v2598_v5 = vld [vmem:[#allocation2 + $0x3c0] ss:$16 sps:$4 sm:$0xff]   ;;  %v2606_v7 = vld [vmem:[#allocation2 + $0x3e4] ss:$16 sps:$4 sm:$0xff]  }
  0x8b   :  { %1188 = vmatprep.subr.bf16.mxu1 %v2519_v8  ;;  %v2609_v8 = vld [vmem:[#allocation2 + $0x32c] ss:$16 sps:$4 sm:$0xff]  }
  0x8c   :  { %1078 = vmatmul.mubr.bf16.vlgmr.msra.gmra.mrb[0].mxu0 %v2077_v9 }
  0x8d   :  { %1087 = vmatpush1.bf16.msra.mxu0 %v2514_v10  ;;  %1118 = vmatprep.mubr.bf16.mxu0 %v2080_v35  ;;  %v2607_v10 = vld [vmem:[#allocation2 + $0x328] ss:$16 sps:$4 sm:$0xff]  }
  0x8e   :  { %1189 = vmatpush1.bf16.msra.mxu1 %v2517_v11  ;;  %1088 = vmatprep.subr.bf16.mxu0 %v2522_v12  ;;  %v2614_v11 = vld [vmem:[#allocation2 + $0x34c] ss:$16 sps:$4 sm:$0xff]  }
  0x8f   :  { %1190 = vmatprep.subr.bf16.mxu1 %v2525_v13  ;;  %v2649_v12 = vld [vmem:[#allocation4 + $0x4] ss:$8 sps:$4 sm:$0xff]   ;;  %v2612_v13 = vld [vmem:[#allocation2 + $0x348] ss:$16 sps:$4 sm:$0xff]  }
  0x91   :  { %1089 = vmatpush1.bf16.msra.mxu0 %v2520_v14  ;;  %v2647_v14 = vld [vmem:[#allocation4] ss:$8 sps:$4 sm:$0xff]  }
  0x92   :  { %1191 = vmatpush1.bf16.msra.mxu1 %v2523_v15  ;;  %1090 = vmatprep.subr.bf16.mxu0 %v2528_v16  ;;  %v2079_v15 = vcombine.low %v3000_v34, %v3000_v34  ;;  %v2617_v16 = vld [vmem:[#allocation2 + $0x36c] ss:$16 sps:$4 sm:$0xff]   ;;  %v2627_v34 = vld [vmem:[#allocation2 + $0x3e8] ss:$16 sps:$4 sm:$0xff]  }
  0x93   :  { %1192 = vmatprep.subr.bf16.mxu1 %v2531_v17  ;;  %v2652_v17 = vld [vmem:[#allocation4 + $0x14] ss:$8 sps:$4 sm:$0xff]  }
  0x95   :  { %1091 = vmatpush1.bf16.msra.mxu0 %v2526_v18  ;;  %v2615_v18 = vld [vmem:[#allocation2 + $0x368] ss:$16 sps:$4 sm:$0xff]  }
  0x96   :  { %1193 = vmatpush1.bf16.msra.mxu1 %v2529_v19  ;;  %1092 = vmatprep.subr.bf16.mxu0 %v2534_v20  ;;  %v2650_v19 = vld [vmem:[#allocation4 + $0x10] ss:$8 sps:$4 sm:$0xff]   ;;  %v2620_v20 = vld [vmem:[#allocation2 + $0x38c] ss:$16 sps:$4 sm:$0xff]  }
  0x97   :  { %1194 = vmatprep.subr.bf16.mxu1 %v2537_v21  ;;  %v2655_v21 = vld [vmem:[#allocation4 + $0x24] ss:$8 sps:$4 sm:$0xff]  }
  0x99   :  { %1093 = vmatpush1.bf16.msra.mxu0 %v2532_v22  ;;  %v2618_v22 = vld [vmem:[#allocation2 + $0x388] ss:$16 sps:$4 sm:$0xff]  }
  0x9a   :  { %1195 = vmatpush1.bf16.msra.mxu1 %v2535_v23  ;;  %1094 = vmatprep.subr.bf16.mxu0 %v2540_v24  ;;  %v2653_v23 = vld [vmem:[#allocation4 + $0x20] ss:$8 sps:$4 sm:$0xff]   ;;  %v2623_v24 = vld [vmem:[#allocation2 + $0x3ac] ss:$16 sps:$4 sm:$0xff]  }
  0x9b   :  { %1196 = vmatprep.subr.bf16.mxu1 %v2543_v25  ;;  %v2658_v25 = vld [vmem:[#allocation4 + $0x34] ss:$8 sps:$4 sm:$0xff]  }
  0x9d   :  { %1095 = vmatpush1.bf16.msra.mxu0 %v2538_v26  ;;  %v2621_v26 = vld [vmem:[#allocation2 + $0x3a8] ss:$16 sps:$4 sm:$0xff]  }
  0x9e   :  { %1197 = vmatpush1.bf16.msra.mxu1 %v2541_v27  ;;  %1096 = vmatprep.subr.bf16.mxu0 %v2546_v28  ;;  %v2656_v27 = vld [vmem:[#allocation4 + $0x30] ss:$8 sps:$4 sm:$0xff]   ;;  %v2626_v28 = vld [vmem:[#allocation2 + $0x3cc] ss:$16 sps:$4 sm:$0xff]  }
  0x9f   :  { %1198 = vmatprep.subr.bf16.mxu1 %v2549_v29  ;;  %v2661_v29 = vld [vmem:[#allocation4 + $0x44] ss:$8 sps:$4 sm:$0xff]  }
  0xa1   :  { %1097 = vmatpush1.bf16.msra.mxu0 %v2544_v30  ;;  %v2624_v30 = vld [vmem:[#allocation2 + $0x3c8] ss:$16 sps:$4 sm:$0xff]  }
  0xa2   :  { %1199 = vmatpush1.bf16.msra.mxu1 %v2547_v31  ;;  %1098 = vmatprep.subr.bf16.mxu0 %v2552_v32  ;;  %v2659_v31 = vld [vmem:[#allocation4 + $0x40] ss:$8 sps:$4 sm:$0xff]   ;;  %v2629_v32 = vld [vmem:[#allocation2 + $0x3ec] ss:$16 sps:$4 sm:$0xff]  }
  0xa3   :  { %1209 = vmatprep.subr.bf16.mxu1 %v2555_v33  ;;  %v2664_v33 = vld [vmem:[#allocation4 + $0x54] ss:$8 sps:$4 sm:$0xff]  }
  0xa5   :  { %1201 = vmatmul.mubr.bf16.vlgmr.msra.gmra.mrb[4].mxu1 %v2077_v9  ;;  %1099 = vmatpush1.bf16.msra.mxu0 %v2550_v36  ;;  %v2604_v9 = vld [vmem:[#allocation2 + $0x3e0] ss:$16 sps:$4 sm:$0xff]   ;;  %v2632_v36 = vld [vmem:[#allocation2 + $0x40c] ss:$16 sps:$4 sm:$0xff]  }
  0xa6   :  { %1210 = vmatpush1.bf16.msra.mxu1 %v2553_v37  ;;  %1100 = vmatprep.subr.bf16.mxu0 %v2558_v38  ;;  %v2667_v37 = vld [vmem:[#allocation4 + $0x64] ss:$8 sps:$4 sm:$0xff]   ;;  %v2630_v38 = vld [vmem:[#allocation2 + $0x408] ss:$16 sps:$4 sm:$0xff]  }
  0xa7   :  { %1211 = vmatprep.subr.bf16.mxu1 %v2561_v39  ;;  %1241 = vmatprep.mubr.bf16.mxu1 %v2080_v35  ;;  %v2662_v35 = vld [vmem:[#allocation4 + $0x50] ss:$8 sps:$4 sm:$0xff]   ;;  %v2635_v39 = vld [vmem:[#allocation2 + $0x42c] ss:$16 sps:$4 sm:$0xff]  }
  0xa9   :  { %1101 = vmatpush1.bf16.msra.mxu0 %v2556_v40  ;;  %v2665_v40 = vld [vmem:[#allocation4 + $0x60] ss:$8 sps:$4 sm:$0xff]  }
  0xaa   :  { %1212 = vmatpush1.bf16.msra.mxu1 %v2559_v41  ;;  %1102 = vmatprep.subr.bf16.mxu0 %v2564_v42  ;;  %v2670_v41 = vld [vmem:[#allocation4 + $0x74] ss:$8 sps:$4 sm:$0xff]   ;;  %v2633_v42 = vld [vmem:[#allocation2 + $0x428] ss:$16 sps:$4 sm:$0xff]  }
  0xab   :  { %1213 = vmatprep.subr.bf16.mxu1 %v2567_v43  ;;  %v2638_v43 = vld [vmem:[#allocation2 + $0x44c] ss:$16 sps:$4 sm:$0xff]  }
  0xad   :  { %1103 = vmatpush1.bf16.msra.mxu0 %v2562_v44  ;;  %v2668_v44 = vld [vmem:[#allocation4 + $0x70] ss:$8 sps:$4 sm:$0xff]  }
  0xae   :  { %1214 = vmatpush1.bf16.msra.mxu1 %v2565_v45  ;;  %1104 = vmatprep.subr.bf16.mxu0 %v2570_v46  ;;  %v2673_v45 = vld [vmem:[#allocation4 + $0x84] ss:$8 sps:$4 sm:$0xff]   ;;  %v2636_v46 = vld [vmem:[#allocation2 + $0x448] ss:$16 sps:$4 sm:$0xff]  }
  0xaf   :  { %1215 = vmatprep.subr.bf16.mxu1 %v2573_v47  ;;  %v2641_v47 = vld [vmem:[#allocation2 + $0x46c] ss:$16 sps:$4 sm:$0xff]  }
  0xb1   :  { %1105 = vmatpush1.bf16.msra.mxu0 %v2568_v48  ;;  %v2671_v48 = vld [vmem:[#allocation4 + $0x80] ss:$8 sps:$4 sm:$0xff]  }
  0xb2   :  { %1216 = vmatpush1.bf16.msra.mxu1 %v2571_v49  ;;  %1106 = vmatprep.subr.bf16.mxu0 %v2576_v50  ;;  %v2676_v49 = vld [vmem:[#allocation4 + $0x94] ss:$8 sps:$4 sm:$0xff]   ;;  %v2639_v50 = vld [vmem:[#allocation2 + $0x468] ss:$16 sps:$4 sm:$0xff]  }
  0xb3   :  { %1217 = vmatprep.subr.bf16.mxu1 %v2579_v51  ;;  %v2644_v51 = vld [vmem:[#allocation2 + $0x48c] ss:$16 sps:$4 sm:$0xff]  }
  0xb5   :  { %1107 = vmatpush1.bf16.msra.mxu0 %v2574_v52  ;;  %v238_v52 = vld [vmem:[#allocation2 + $0x4a8] sm:$0xff] }
  0xb6   :  { %1218 = vmatpush1.bf16.msra.mxu1 %v2577_v53  ;;  %1108 = vmatprep.subr.bf16.mxu0 %v2582_v54  ;;  %v2679_v53 = vld [vmem:[#allocation4 + $0xa4] ss:$8 sps:$4 sm:$0xff]   ;;  %v2642_v54 = vld [vmem:[#allocation2 + $0x488] ss:$16 sps:$4 sm:$0xff]  }
  0xb7   :  { %1219 = vmatprep.subr.bf16.mxu1 %v2585_v55  ;;  %v2233_v55 = vcombine.high %v238_v52, %v238_v52 }
  0xb9   :  { %1109 = vmatpush1.bf16.msra.mxu0 %v2580_v56  ;;  %v2232_v56 = vcombine.low %v238_v52, %v238_v52 }
  0xba   :  { %1220 = vmatpush1.bf16.msra.mxu1 %v2583_v57  ;;  %1110 = vmatprep.subr.bf16.mxu0 %v2588_v58  ;;  %v2677_v57 = vld [vmem:[#allocation4 + $0xa0] ss:$8 sps:$4 sm:$0xff]   ;;  %v2682_v58 = vld [vmem:[#allocation4 + $0xb4] ss:$8 sps:$4 sm:$0xff]  }
  0xbb   :  { %1221 = vmatprep.subr.bf16.mxu1 %v2591_v59  ;;  %v1040_v59 = vsel %vm1032_vm0, %v2232_v56, 0 }
  0xbd   :  { %1111 = vmatpush1.bf16.msra.mxu0 %v2586_v60  ;;  %v2680_v60 = vld [vmem:[#allocation4 + $0xb0] ss:$8 sps:$4 sm:$0xff]  }
  0xbe   :  { %1222 = vmatpush1.bf16.msra.mxu1 %v2589_v61  ;;  %1112 = vmatprep.subr.bf16.mxu0 %v2594_v62  ;;  %v2781_v61 = vld [vmem:[%s3069_s0 + $0x10] ss:$0 sps:$4 sm:$0xff]   ;;  %v2685_v62 = vld [vmem:[#allocation4 + $0xc4] ss:$8 sps:$4 sm:$0xff]  }
  0xbf   :  { %1223 = vmatprep.subr.bf16.mxu1 %v2597_v63  ;;  %v2683_v63 = vld [vmem:[#allocation4 + $0xc0] ss:$8 sps:$4 sm:$0xff]  }
  0xc1   :  { %1113 = vmatpush1.bf16.msra.mxu0 %v2592_v1  ;;  %v2688_v1 = vld [vmem:[#allocation4 + $0xd4] ss:$8 sps:$4 sm:$0xff]  }
  0xc2   :  { %1224 = vmatpush1.bf16.msra.mxu1 %v2595_v2  ;;  %1114 = vmatprep.subr.bf16.mxu0 %v2600_v3  ;;  %v2686_v2 = vld [vmem:[#allocation4 + $0xd0] ss:$8 sps:$4 sm:$0xff]   ;;  %v2691_v3 = vld [vmem:[#allocation4 + $0xe4] ss:$8 sps:$4 sm:$0xff]  }
  0xc3   :  { %1225 = vmatprep.subr.bf16.mxu1 %v2603_v4  ;;  %v2689_v4 = vld [vmem:[#allocation4 + $0xe0] ss:$8 sps:$4 sm:$0xff]  }
  0xc5   :  { %1115 = vmatpush1.bf16.msra.mxu0 %v2598_v5  ;;  %v2694_v5 = vld [vmem:[#allocation4 + $0xf4] ss:$8 sps:$4 sm:$0xff]  }
  0xc6   :  { %1226 = vmatpush1.bf16.msra.mxu1 %v2601_v6  ;;  %1116 = vmatprep.subr.bf16.mxu0 %v2606_v7  ;;  %v2692_v6 = vld [vmem:[#allocation4 + $0xf0] ss:$8 sps:$4 sm:$0xff]   ;;  %v2697_v7 = vld [vmem:[#allocation4 + $0x104] ss:$8 sps:$4 sm:$0xff]  }
  0xc7   :  { %1227 = vmatprep.subr.bf16.mxu1 %v2609_v8 }
  0xc9   :  { %1117 = vmatpush1.bf16.msra.mxu0 %v2604_v9 }
  0xca   :  { %1228 = vmatpush1.bf16.msra.mxu1 %v2607_v10  ;;  %1695 = vmatprep.subr.bf16.mxu0 %v2649_v12  ;;  %v2743_v12 = vld [vmem:[#allocation6 + $0x40] sm:$0xff]  }
  0xcb   :  { %1229 = vmatprep.subr.bf16.mxu1 %v2614_v11 }
  0xcc   :  { %1119 = vmatmul.mubr.bf16.vlgmr.msra.gmra.mrb[0].mxu0 %v2079_v15 }
  0xcd   :  { %1696 = vmatpush1.bf16.msra.mxu0 %v2647_v14  ;;  %v2745_v14 = vld [vmem:[#allocation6 + $0x48] sm:$0xff]  }
  0xce   :  { %1230 = vmatpush1.bf16.msra.mxu1 %v2612_v13  ;;  %1697 = vmatprep.subr.bf16.mxu0 %v2652_v17  ;;  %v2744_v13 = vld [vmem:[#allocation6] sm:$0xff]   ;;  %v2748_v17 = vld [vmem:[#allocation6 + $0x10] sm:$0xff]  }
  0xcf   :  { %1231 = vmatprep.subr.bf16.mxu1 %v2617_v16  ;;  %v2747_v16 = vld [vmem:[#allocation6 + $0x50] sm:$0xff]  }
  0xd1   :  { %1698 = vmatpush1.bf16.msra.mxu0 %v2650_v19  ;;  %v2750_v19 = vld [vmem:[#allocation6 + $0x18] sm:$0xff]  }
  0xd2   :  { %1232 = vmatpush1.bf16.msra.mxu1 %v2615_v18  ;;  %1699 = vmatprep.subr.bf16.mxu0 %v2655_v21  ;;  %v2749_v18 = vld [vmem:[#allocation6 + $0x58] sm:$0xff]  }
  0xd3   :  { %1233 = vmatprep.subr.bf16.mxu1 %v2620_v20  ;;  %v241_v20 = vlaneseq }
  0xd5   :  { %1700 = vmatpush1.bf16.msra.mxu0 %v2653_v23  ;;  %v3013_v21 = vshrl.u32 %v241_v20, 7  ;;  %v3019_v23 = vld [vmem:[%s3071_s2] sm:$0xf]  ;;  %v2751_v20 = vld [vmem:[#allocation6 + $0x60] sm:$0xff]  }
  0xd6   :  { %1234 = vmatpush1.bf16.msra.mxu1 %v2618_v22  ;;  %1701 = vmatprep.subr.bf16.mxu0 %v2658_v25 }
  0xd7   :  { %1235 = vmatprep.subr.bf16.mxu1 %v2623_v24  ;;  %v243_v22 = vsub.s32 0, %v3013_v21  ;;  %v247_v24 = vsub.s32 1, %v3013_v21  ;;  %v255_v52 = vsub.s32 3, %v3013_v21 }
  0xd9   :  { %1702 = vmatpush1.bf16.msra.mxu0 %v2656_v27  ;;  %v244_v25 = vrot.slane %v3019_v23, %v243_v22 }
  0xda   :  { %1236 = vmatpush1.bf16.msra.mxu1 %v2621_v26  ;;  %1703 = vmatprep.subr.bf16.mxu0 %v2661_v29  ;;  %v248_v26 = vrot.slane %v3019_v23, %v247_v24 }
  0xdb   :  { %1237 = vmatprep.subr.bf16.mxu1 %v2626_v28 }
  0xdd   :  { %1704 = vmatpush1.bf16.msra.mxu0 %v2659_v31 }
  0xde   :  { %1238 = vmatpush1.bf16.msra.mxu1 %v2624_v30  ;;  %1705 = vmatprep.subr.bf16.mxu0 %v2664_v33 }
  0xdf   :  { %1239 = vmatprep.subr.bf16.mxu1 %v2629_v32 }
  0xe1   :  { %1706 = vmatpush1.bf16.msra.mxu0 %v2662_v35 }
  0xe2   :  { %1240 = vmatpush1.bf16.msra.mxu1 %v2627_v34  ;;  %1707 = vmatprep.subr.bf16.mxu0 %v2667_v37 }
  0xe3   :  { %1250 = vmatprep.subr.bf16.mxu1 %v2632_v36 }
  0xe5   :  { %1242 = vmatmul.mubr.bf16.vlgmr.msra.gmra.mrb[4].mxu1 %v2079_v15  ;;  %1708 = vmatpush1.bf16.msra.mxu0 %v2665_v40  ;;  %v2746_v15 = vld [vmem:[#allocation6 + $0x8] sm:$0xff]   ;;  %v2700_v40 = vld [vmem:[#allocation4 + $0x114] ss:$8 sps:$4 sm:$0xff]  }
  0xe6   :  { %1251 = vmatpush1.bf16.msra.mxu1 %v2630_v38  ;;  %1282 = vmatprep.mubr.bf16.mxu1 %v2886_v0  ;;  %v2674_v0 = vld [vmem:[#allocation4 + $0x90] ss:$8 sps:$4 sm:$0xff]   ;;  %v2695_v38 = vld [vmem:[#allocation4 + $0x100] ss:$8 sps:$4 sm:$0xff]  }
  0xe7   :  { %1252 = vmatprep.subr.bf16.mxu1 %v2635_v39  ;;  %1709 = vmatprep.subr.bf16.mxu0 %v2670_v41  ;;  %v2698_v41 = vld [vmem:[#allocation4 + $0x110] ss:$8 sps:$4 sm:$0xff]  }
  0xe9   :  { %1710 = vmatpush1.bf16.msra.mxu0 %v2668_v44  ;;  %v2706_v44 = vld [vmem:[#allocation4 + $0x134] ss:$8 sps:$4 sm:$0xff]  }
  0xea   :  { %1253 = vmatpush1.bf16.msra.mxu1 %v2633_v42  ;;  %1711 = vmatprep.subr.bf16.mxu0 %v2673_v45  ;;  %v2703_v42 = vld [vmem:[#allocation4 + $0x124] ss:$8 sps:$4 sm:$0xff]   ;;  %v2704_v45 = vld [vmem:[#allocation4 + $0x130] ss:$8 sps:$4 sm:$0xff]  }
  0xeb   :  { %1254 = vmatprep.subr.bf16.mxu1 %v2638_v43  ;;  %v2701_v43 = vld [vmem:[#allocation4 + $0x120] ss:$8 sps:$4 sm:$0xff]  }
  0xed   :  { %1712 = vmatpush1.bf16.msra.mxu0 %v2671_v48  ;;  %v2712_v48 = vld [vmem:[#allocation4 + $0x154] ss:$8 sps:$4 sm:$0xff]  }
  0xee   :  { %1255 = vmatpush1.bf16.msra.mxu1 %v2636_v46  ;;  %1713 = vmatprep.subr.bf16.mxu0 %v2676_v49  ;;  %v2709_v46 = vld [vmem:[#allocation4 + $0x144] ss:$8 sps:$4 sm:$0xff]   ;;  %v2710_v49 = vld [vmem:[#allocation4 + $0x150] ss:$8 sps:$4 sm:$0xff]  }
  0xef   :  { %1256 = vmatprep.subr.bf16.mxu1 %v2641_v47  ;;  %v2707_v47 = vld [vmem:[#allocation4 + $0x140] ss:$8 sps:$4 sm:$0xff]  }
  0xf1   :  { %1714 = vmatpush1.bf16.msra.mxu0 %v2674_v0  ;;  %v2718_v0 = vld [vmem:[#allocation4 + $0x174] ss:$8 sps:$4 sm:$0xff]  }
  0xf2   :  { %1257 = vmatpush1.bf16.msra.mxu1 %v2639_v50  ;;  %1715 = vmatprep.subr.bf16.mxu0 %v2679_v53  ;;  %v2715_v50 = vld [vmem:[#allocation4 + $0x164] ss:$8 sps:$4 sm:$0xff]   ;;  %v2716_v53 = vld [vmem:[#allocation4 + $0x170] ss:$8 sps:$4 sm:$0xff]  }
  0xf3   :  { %1258 = vmatprep.subr.bf16.mxu1 %v2644_v51  ;;  %v2713_v51 = vld [vmem:[#allocation4 + $0x160] ss:$8 sps:$4 sm:$0xff]  }
  0xf5   :  { %1716 = vmatpush1.bf16.msra.mxu0 %v2677_v57 }
  0xf6   :  { %1259 = vmatpush1.bf16.msra.mxu1 %v2642_v54  ;;  %1717 = vmatprep.subr.bf16.mxu0 %v2682_v58  ;;  %v256_v54 = vrot.slane %v3019_v23, %v255_v52  ;;  %v2719_v58 = vld [vmem:[#allocation4 + $0x180] ss:$8 sps:$4 sm:$0xff]  }
  0xf7   :  { %2236 = vmatprep.subr.msk.bf16.mxu1 %vm1032_vm0, %v2233_v55  ;;  %v2721_v55 = vld [vmem:[#allocation4 + $0x184] ss:$8 sps:$4 sm:$0xff]  }
  0xf9   :  { %1718 = vmatpush1.bf16.msra.mxu0 %v2680_v60 }
  0xfa   :  { %1261 = vmatpush1.bf16.msra.mxu1 %v1040_v59  ;;  %1719 = vmatprep.subr.bf16.mxu0 %v2685_v62 }
  0xfb   :  { %2328 = vmatprep.subr.bf16.mxu1 %v2743_v12  ;;  %v2736_v12 = vld [vmem:[#allocation4 + $0x1d4] ss:$8 sps:$4 sm:$0xff]  }
  0xfd   :  { %2237 = vmatmul.mubr.msk.bf16.vlgmr.msra.gmra.mrb[4].mxu1 %vm1028_vm1, %v2781_v61  ;;  %1720 = vmatpush1.bf16.msra.mxu0 %v2683_v63  ;;  %v2724_v61 = vld [vmem:[#allocation4 + $0x194] ss:$8 sps:$4 sm:$0xff]   ;;  %v2722_v63 = vld [vmem:[#allocation4 + $0x190] ss:$8 sps:$4 sm:$0xff]  }
  0xfe   :  { %1721 = vmatprep.subr.bf16.mxu0 %v2688_v1  ;;  %2329 = vmatpush3.bf16.msra.mxu1 %v2744_v13  ;;  %v2727_v1 = vld [vmem:[#allocation4 + $0x1a4] ss:$8 sps:$4 sm:$0xff]   ;;  %v2734_v13 = vld [vmem:[#allocation4 + $0x1d0] ss:$8 sps:$4 sm:$0xff]  }
  0xff   :  { %2330 = vmatprep.subr.bf16.mxu1 %v2745_v14  ;;  %v2739_v14 = vld [vmem:[#allocation4 + $0x1e4] ss:$8 sps:$4 sm:$0xff]  }
 0x101   :  { %1722 = vmatpush1.bf16.msra.mxu0 %v2686_v2  ;;  %v251_v2 = vsub.s32 2, %v3013_v21  ;;  %v2760_v21 = vld [vmem:[%s3076_s7 + $0x8] sm:$0xff]  }
 0x102   :  { %1723 = vmatprep.subr.bf16.mxu0 %v2691_v3  ;;  %2331 = vmatpush3.bf16.msra.mxu1 %v2746_v15  ;;  %v2725_v3 = vld [vmem:[#allocation4 + $0x1a0] ss:$8 sps:$4 sm:$0xff]  }
 0x103   :  { %2332 = vmatprep.subr.bf16.mxu1 %v2747_v16  ;;  %v2737_v15 = vld [vmem:[#allocation4 + $0x1e0] ss:$8 sps:$4 sm:$0xff]   ;;  %v2742_v16 = vld [vmem:[#allocation4 + $0x1f4] ss:$8 sps:$4 sm:$0xff]  }
 0x105   :  { %1724 = vmatpush1.bf16.msra.mxu0 %v2689_v4  ;;  %v2730_v4 = vld [vmem:[#allocation4 + $0x1b4] ss:$8 sps:$4 sm:$0xff]  }
 0x106   :  { %1725 = vmatprep.subr.bf16.mxu0 %v2694_v5  ;;  %2333 = vmatpush3.bf16.msra.mxu1 %v2748_v17  ;;  %v252_v5 = vrot.slane %v3019_v23, %v251_v2  ;;  %v2740_v17 = vld [vmem:[#allocation4 + $0x1f0] ss:$8 sps:$4 sm:$0xff]   ;;  %v2752_v23 = vld [vmem:[#allocation6 + $0x20] sm:$0xff]  }
 0x107   :  { %2334 = vmatprep.subr.bf16.mxu1 %v2749_v18 }
 0x109   :  { %1726 = vmatpush1.bf16.msra.mxu0 %v2692_v6  ;;  %v2728_v6 = vld [vmem:[#allocation4 + $0x1b0] ss:$8 sps:$4 sm:$0xff]  }
 0x10a   :  { %1736 = vmatprep.subr.bf16.mxu0 %v2697_v7  ;;  %2335 = vmatpush3.bf16.msra.mxu1 %v2750_v19 }
 0x10b   :  { %2336 = vmatprep.subr.bf16.mxu1 %v2751_v20 }
 0x10e   :  { %2337 = vmatpush3.bf16.msra.mxu1 %v2752_v23 }
 0x138   :  { %v1161_v8 = vpop.f32.mrb[0].mxu1 }
 0x139   :  { %v1163_v9 = vpop.f32.mrb[1].mxu1 }
 0x13a   :  { %v1165_v10 = vpop.f32.mrb[2].mxu1 }
 0x13b   :  { %v1166_v11 = vpop.f32.mrb[3].mxu1 }
 0x13c   :  { %v2731_v11 = vld [vmem:[#allocation4 + $0x1c0] ss:$8 sps:$4 sm:$0xff]  }
 0x19f   :  { %v1120_v27 = vpop.f32.mrb[0].mxu0 }
 0x1a0   :  { %v2379_v28 = vadd.f32 %v1120_v27, %v244_v25  ;;  %v1122_v29 = vpop.f32.mrb[1].mxu0  ;;  %v2753_v25 = vld [vmem:[#allocation6 + $0x68] sm:$0xff]   ;;  %v2755_v27 = vld [vmem:[#allocation6 + $0x70] sm:$0xff]  }
 0x1a1   :  { %v2381_v30 = vadd.f32 %v1122_v29, %v248_v26  ;;  %v1124_v31 = vpop.f32.mrb[2].mxu0  ;;  %v2754_v26 = vld [vmem:[#allocation6 + $0x28] sm:$0xff]   ;;  %2338 = vmatprep.subr.bf16.mxu1 %v2753_v25  ;;  %v2757_v29 = vld [vmem:[#allocation6 + $0x78] sm:$0xff]  }
 0x1a2   :  { %v2380_v32 = vadd.f32 %v2379_v28, %v1161_v8  ;;  %v1125_v33 = vpop.f32.mrb[3].mxu0  ;;  %v2733_v8 = vld [vmem:[#allocation4 + $0x1c4] ss:$8 sps:$4 sm:$0xff]   ;;  %2339 = vmatpush3.bf16.msra.mxu1 %v2754_v26  ;;  %v2756_v28 = vld [vmem:[#allocation6 + $0x30] sm:$0xff]   ;;  %v2887_v31 = vmov 0.0  }
 0x1a3   :  { %v2382_v34 = vadd.f32 %v2381_v30, %v1163_v9  ;;  %2340 = vmatprep.subr.bf16.mxu1 %v2755_v27  ;;  %v2758_v30 = vld [vmem:[#allocation6 + $0x38] sm:$0xff]  }
 0x1a4   :  { %2767 = vtanh.f32 %v2380_v32  ;;  %v1363_v32 = vld [vmem:[%s3073_s4] sm:$0x3] }
 0x1a5   :  { %2769 = vtanh.f32 %v2382_v34  ;;  %v1368_v33 = vrot.slane %v1363_v32, %v243_v22  ;;  %v1372_v34 = vrot.slane %v1363_v32, %v247_v24  ;;  %v2761_v22 = vld [vmem:[%s3076_s7 + $0x10] sm:$0xff]   ;;  %v2762_v24 = vld [vmem:[%s3076_s7 + $0x18] sm:$0xff]  }
 0x1a6   :  { %2341 = vmatpush3.bf16.msra.mxu1 %v2756_v28 }
 0x1a7   :  { %2342 = vmatprep.subr.bf16.mxu1 %v2757_v29 }
 0x1aa   :  { %2343 = vmatpush3.bf16.msra.mxu1 %v2758_v30 }
 0x1ab   :  { %2359 = vmatprep.subr.bf16.mxu1 %v2887_v31 }
 0x1ae   :  { %v2768_v35 = vpop.eup %2767 }
 0x1af   :  { %v2770_v36 = vpop.eup %2769  ;;  %v1295_v39 = vpack.c.bf16 %v2768_v35, %v2768_v35 }
 0x1b0   :  { %v1296_v37 = vpack.c.bf16 %v2770_v36, %v2770_v36 }
 0x1b2   :  { %1727 = vmatprep.mubr.bf16.mxu0 %v1296_v37 }
 0x1b3   :  { %1728 = vmatmul.mubr.bf16.vlgmr.msra.gmra.mrb[4].mxu0 %v1295_v39 }
 0x1b4   :  { %1737 = vmatpush1.bf16.msra.mxu0 %v2695_v38 }
 0x1b5   :  { %1738 = vmatprep.subr.bf16.mxu0 %v2700_v40 }
 0x1b8   :  { %1739 = vmatpush1.bf16.msra.mxu0 %v2698_v41 }
 0x1b9   :  { %1740 = vmatprep.subr.bf16.mxu0 %v2703_v42 }
 0x1bc   :  { %1741 = vmatpush1.bf16.msra.mxu0 %v2701_v43 }
 0x1bd   :  { %1742 = vmatprep.subr.bf16.mxu0 %v2706_v44  ;;  %v2759_v44 = vld [vmem:[%s3076_s7] sm:$0xff]  }
 0x1c0   :  { %1743 = vmatpush1.bf16.msra.mxu0 %v2704_v45 }
 0x1c1   :  { %1744 = vmatprep.subr.bf16.mxu0 %v2709_v46  ;;  %v2763_v46 = vld [vmem:[%s3076_s7 + $0x20] sm:$0xff]  }
 0x1c4   :  { %1745 = vmatpush1.bf16.msra.mxu0 %v2707_v47  ;;  %v2764_v47 = vld [vmem:[%s3076_s7 + $0x28] sm:$0xff]  }
 0x1c5   :  { %1746 = vmatprep.subr.bf16.mxu0 %v2712_v48  ;;  %v2765_v48 = vld [vmem:[%s3076_s7 + $0x30] sm:$0xff]  }
 0x1c8   :  { %1747 = vmatpush1.bf16.msra.mxu0 %v2710_v49  ;;  %v2766_v49 = vld [vmem:[%s3076_s7 + $0x38] sm:$0xff]  }
 0x1c9   :  { %1748 = vmatprep.subr.bf16.mxu0 %v2715_v50 }
 0x1cc   :  { %1749 = vmatpush1.bf16.msra.mxu0 %v2713_v51  ;;  %v2302_v51 = vld [vmem:[%s3075_s6] ss:$0 sm:$0xff] }
 0x1cd   :  { %1750 = vmatprep.subr.bf16.mxu0 %v2718_v0 }
 0x1d0   :  { %v1284_v56 = vpop.f32.mrb[4].mxu1  ;;  %1751 = vmatpush1.bf16.msra.mxu0 %v2716_v53 }
 0x1d1   :  { %v1286_v57 = vpop.f32.mrb[5].mxu1  ;;  %1752 = vmatprep.subr.bf16.mxu0 %v2721_v55  ;;  %v2383_v10 = vadd.f32 %v1284_v56, %v252_v5 }
 0x1d2   :  { %v2384_v59 = vadd.f32 %v1286_v57, %v256_v54  ;;  %v1288_v60 = vpop.f32.mrb[6].mxu1 }
 0x1d3   :  { %v1289_v62 = vpop.f32.mrb[7].mxu1 }
 0x1d4   :  { %2771 = vtanh.f32 %v2384_v59  ;;  %1753 = vmatpush1.bf16.msra.mxu0 %v2719_v58  ;;  %v2319_v58 = vld [vmem:[#allocation7] ss:$0 sm:$0xff] }
 0x1d5   :  { %1754 = vmatprep.subr.bf16.mxu0 %v2724_v61  ;;  %2773 = vtanh.f32 %v2383_v10 }
 0x1d8   :  { %1755 = vmatpush1.bf16.msra.mxu0 %v2722_v63 }
 0x1d9   :  { %1756 = vmatprep.subr.bf16.mxu0 %v2727_v1 }
 0x1dc   :  { %1757 = vmatpush1.bf16.msra.mxu0 %v2725_v3 }
 0x1dd   :  { %1758 = vmatprep.subr.bf16.mxu0 %v2730_v4 }
 0x1de   :  { %v2772_v7 = vpop.eup %2771 }
 0x1df   :  { %v1298_v9 = vpack.c.bf16 %v2772_v7, %v2772_v7  ;;  %v2774_v18 = vpop.eup %2773 }
 0x1e0   :  { %1759 = vmatpush1.bf16.msra.mxu0 %v2728_v6  ;;  %v1297_v19 = vpack.c.bf16 %v2774_v18, %v2774_v18 }
 0x1e1   :  { %1768 = vmatprep.mubr.bf16.mxu0 %v1298_v9  ;;  %1760 = vmatprep.subr.bf16.mxu0 %v2733_v8 }
 0x1e4   :  { %1761 = vmatpush1.bf16.msra.mxu0 %v2731_v11 }
 0x1e5   :  { %1762 = vmatprep.subr.bf16.mxu0 %v2736_v12 }
 0x1e8   :  { %1763 = vmatpush1.bf16.msra.mxu0 %v2734_v13 }
 0x1e9   :  { %1764 = vmatprep.subr.bf16.mxu0 %v2739_v14 }
 0x1ec   :  { %1765 = vmatpush1.bf16.msra.mxu0 %v2737_v15 }
 0x1ed   :  { %1766 = vmatprep.subr.bf16.mxu0 %v2742_v16 }
 0x1f0   :  { %1767 = vmatpush1.bf16.msra.mxu0 %v2740_v17 }
 0x1f3   :  { %1769 = vmatmul.mubr.bf16.vlgmr.msra.gmra.mrb[4].mxu0 %v1297_v19 }
 0x2c6   :  { %v1770_v35 = vpop.f32.mrb[4].mxu0 }
 0x2c7   :  { %v2385_v36 = vadd.f32 %v1770_v35, %v1368_v33  ;;  %v1772_v37 = vpop.f32.mrb[5].mxu0 }
 0x2c8   :  { %v2386_v38 = vadd.f32 %v1772_v37, %v1372_v34  ;;  %v1774_v39 = vpop.f32.mrb[6].mxu0 }
 0x2c9   :  { %2775 = vtanh.f32 %v2385_v36  ;;  %v1775_v40 = vpop.f32.mrb[7].mxu0 }
 0x2ca   :  { %2777 = vtanh.f32 %v2386_v38 }
 0x2d3   :  { %v2776_v41 = vpop.eup %2775 }
 0x2d4   :  { %v2778_v42 = vpop.eup %2777  ;;  %v1779_v45 = vpack.c.bf16 %v2776_v41, %v2776_v41 }
 0x2d5   :  { %v1780_v43 = vpack.c.bf16 %v2778_v42, %v2778_v42 }
 0x2d7   :  { %1948 = vmatprep.mubr.bf16.mxu1 %v1780_v43 }
 0x2d8   :  { %1949 = vmatmul.mubr.bf16.vlgmr.msra.gmra.mrb[8].mxu1 %v1779_v45 }
 0x2d9   :  { %2360 = vmatpush3.bf16.msra.mxu1 %v2759_v44  ;;  %2375 = vmatprep.mubr.msk.bf16.mxu1 %vm2888_vm2, %v2887_v31 }
 0x2da   :  { %2361 = vmatprep.subr.bf16.mxu1 %v2887_v31 }
 0x2dd   :  { %2362 = vmatpush3.bf16.msra.mxu1 %v2760_v21 }
 0x2de   :  { %2363 = vmatprep.subr.bf16.mxu1 %v2887_v31 }
 0x2e1   :  { %2364 = vmatpush3.bf16.msra.mxu1 %v2761_v22 }
 0x2e2   :  { %2365 = vmatprep.subr.bf16.mxu1 %v2887_v31 }
 0x2e5   :  { %2366 = vmatpush3.bf16.msra.mxu1 %v2762_v24 }
 0x2e6   :  { %2367 = vmatprep.subr.bf16.mxu1 %v2887_v31 }
 0x2e9   :  { %2368 = vmatpush3.bf16.msra.mxu1 %v2763_v46 }
 0x2ea   :  { %2369 = vmatprep.subr.bf16.mxu1 %v2887_v31 }
 0x2ed   :  { %2370 = vmatpush3.bf16.msra.mxu1 %v2764_v47 }
 0x2ee   :  { %2371 = vmatprep.subr.bf16.mxu1 %v2887_v31 }
 0x2f1   :  { %2372 = vmatpush3.bf16.msra.mxu1 %v2765_v48 }
 0x2f2   :  { %2373 = vmatprep.subr.bf16.mxu1 %v2887_v31 }
 0x2f5   :  { %2374 = vmatpush3.bf16.msra.mxu1 %v2766_v49 }
 0x3ab   :  { %v2344_v50 = vpop.f32.mrb[8].mxu1 }
 0x3ac   :  { %v2345_v0 = vpop.f32.mrb[9].mxu1 }
 0x3ad   :  { %v2346_v52 = vadd.f32 %v2345_v0, %v2344_v50  ;;  %v2347_v53 = vpop.f32.mrb[10].mxu1 }
 0x3ae   :  { %v2348_v54 = vpop.f32.mrb[11].mxu1 }
 0x3af   :  { %v1951_v55 = vadd.f32 %v2346_v52, %v2302_v51 }
 0x3b1   :  { %2779 = vtanh.f32 %v1951_v55 }
 0x3bb   :  { %v2780_v56 = vpop.eup %2779 }
 0x3bc   :  { %v1957_v57 = vpack.c.bf16 %v2780_v56, %v2780_v56 }
 0x3be   :  { %2376 = vmatmul.mubr.bf16.vlgmr.msra.gmra.mrb[12].mxu1 %v1957_v57 }
 0x491   :  { %v2063_v59 = vpop.f32.mrb[12].mxu1 }
 0x492   :  { %v2064_v60 = vadd.f32 %v2319_v58, %v2063_v59  ;;  %v2377_v61 = vpop.f32.mrb[13].mxu1 }
 0x493   :  { %v2066_v62 = vpop.f32.mrb[14].mxu1 }
 0x494   :  { %2069 = vst [vmem:[%s3078_s9] sm:$0xff] %v2064_v60  ;;  %v2378_v63 = vpop.f32.mrb[15].mxu1 }
 0x495   :  { %2074 = vsyncpa [#allocation3], 1 }
 0x496   :  { %2075 = vsyncpa [#allocation5], 1 }
 0x497   :  { %2076 = vsyncpa [#allocation8], 1 }

</bundles_post_ra>
